<compile_context>
chip_gen: v7x
topology: tpu7x:2x2x1
jax: 0.10.0
libtpu: 0.0.40
codegen_flags: <defaults>
</compile_context>

<pallas_src>
import jax
import jax.numpy as jnp
import numpy as np
from jax.experimental import pallas as pl
from jax.experimental.pallas import tpu as pltpu

_LOG_1000 = 6.907755278982137  # log(1000)


def _make_kernel(lhs_resident):
    def kernel(lhs_ref, rhs_ref, raw_ref, pos_ref):
        # lhs_ref: resident (n_ij, R, ij_tile) (constant index) or per-tile (R, ij_tile)
        # rhs_ref: (ij_tile, c_tile)      -- streamed, lane-dense over C
        # raw_ref / pos_ref: (R, c_tile)  -- raw doubles as the f32 accumulator
        ij = pl.program_id(1)

        @pl.when(ij == 0)
        def _():
            raw_ref[...] = jnp.zeros_like(raw_ref)

        lhs = lhs_ref[ij] if lhs_resident else lhs_ref[...]
        raw_ref[...] += jnp.dot(lhs, rhs_ref[...],
                                preferred_element_type=jnp.float32)

        @pl.when(ij == pl.num_programs(1) - 1)
        def _():
            raw = raw_ref[...]
            # _force_positive(x) = 0.01 + (1 - 0.1) * _log_exp(x)
            # _log_exp: x -> log(1 + exp(x)) where exp(x) < 1000 (x < log 1000).
            # Single clamped exp -> no inf intermediates; matches the torch
            # boundary behaviour at x == log(1000).
            e = jnp.exp(jnp.minimum(raw, _LOG_1000))
            sp = jnp.where(raw < _LOG_1000, jnp.log1p(e), raw)
            pos_ref[...] = (0.01 + (1.0 - 0.1) * sp).astype(pos_ref.dtype)

    return kernel


def _pick_lane_tile(C, R):
    """Lane (last-dim) tile for the output / streamed operand.

    Full-dim block when C is small or not 128-divisible; otherwise the largest
    128-multiple divisor that (a) leaves >= 2 tiles so the parallel grid axis
    can shard across v7x's two TensorCores and (b) keeps the R x c_tile f32
    output block <= ~1 MiB.
    """
    if C < 256 or C % 128 != 0:
        return C
    m = C // 128
    cap = max(1, min(m // 2, (1 << 20) // (4 * max(R, 1) * 128), 32))
    for d in range(cap, 0, -1):
        if m % d == 0:
            return 128 * d
    return 128


def _pick_ij_tile(IJp, c_tile, R, lhs_resident, max_block_bytes=4 << 20):
    """Reduction-axis tile: largest 128-multiple divisor of IJp keeping the
    per-step streamed blocks (rhs, plus lhs when not VMEM-resident) within
    max_block_bytes."""
    m = IJp // 128
    cols = c_tile + (0 if lhs_resident else R)
    cap = max(1, min(m, (max_block_bytes // 4) // max(cols, 1) // 128))
    for d in range(cap, 0, -1):
        if m % d == 0:
            return 128 * d
    return 128


def final_layer_forward(x, dists, init_ls):
    """x: (B, I, J, K) f32, dists: (P, I, J) f32 -> (raw, pos), each (B, P, K).

    raw[b, p, k] = sum_ij x[b, i, j, k] * exp(-0.5 * dists[p, i, j] / ls^2)
    pos          = 0.01 + (1 - 0.1) * softplus-clamped(raw)
    """
    B, I, J, K = x.shape
    P = dists.shape[0]
    IJ = I * J
    BK = B * K

    x = x.astype(jnp.float32)
    scale = jnp.asarray(-0.5 / (float(init_ls) ** 2), jnp.float32)
    # RBF computed exactly once (single elementwise pass over the small dists
    # tensor) instead of per BK tile inside the kernel.
    rbf = jnp.exp(dists.reshape(P, IJ).astype(jnp.float32) * scale)  # (P, IJ)

    # Orientation: the larger of (BK, P) becomes the lane axis C (lane-dense
    # output stores + lane-dense streamed operand); the smaller is the untiled
    # sublane axis R.
    bk_is_lanes = BK >= P
    if bk_is_lanes:
        R, C = P, BK
        lhs = rbf                                                    # (P, IJ)
        rhs = jnp.transpose(x.reshape(B, IJ, K), (1, 0, 2)).reshape(IJ, BK)
    else:
        R, C = BK, P
        lhs = jnp.transpose(x.reshape(B, IJ, K), (0, 2, 1)).reshape(BK, IJ)
        rhs = jnp.transpose(rbf, (1, 0))                             # (IJ, P)

    # Zero-pad the reduction axis to a multiple of 128: padded rhs rows are
    # zero so they contribute nothing, and every block satisfies (8, 128).
    IJp = IJ + (-IJ) % 128
    if IJp != IJ:
        lhs = jnp.pad(lhs, ((0, 0), (0, IJp - IJ)))
        rhs = jnp.pad(rhs, ((0, IJp - IJ), (0, 0)))

    c_tile = _pick_lane_tile(C, R)
    lhs_resident = (R * IJp * 4) <= (2 << 20)
    ij_tile = _pick_ij_tile(IJp, c_tile, R, lhs_resident)
    n_ij = IJp // ij_tile
    grid = (C // c_tile, n_ij)

    if lhs_resident:
        # (n_ij, R, ij_tile) with a constant index_map: fetched once, stays
        # VMEM-resident; the kernel selects the ij tile by leading-axis index.
        lhs_in = lhs.reshape(R, n_ij, ij_tile).transpose(1, 0, 2)
        lhs_spec = pl.BlockSpec((n_ij, R, ij_tile), lambda c, ij: (0, 0, 0))
    else:
        lhs_in = lhs
        lhs_spec = pl.BlockSpec((R, ij_tile), lambda c, ij: (0, ij))

    rhs_spec = pl.BlockSpec((ij_tile, c_tile), lambda c, ij: (ij, c))
    raw_spec = pl.BlockSpec((R, c_tile), lambda c, ij: (0, c))
    pos_spec = pl.BlockSpec((R, c_tile), lambda c, ij: (0, c))

    raw2d, pos2d = pl.pallas_call(
        _make_kernel(lhs_resident),
        out_shape=(jax.ShapeDtypeStruct((R, C), jnp.float32),
                   jax.ShapeDtypeStruct((R, C), jnp.float32)),
        grid_spec=pltpu.PrefetchScalarGridSpec(
            num_scalar_prefetch=0,
            grid=grid,
            in_specs=[lhs_spec, rhs_spec],
            out_specs=[raw_spec, pos_spec],
        ),
        compiler_params=pltpu.CompilerParams(
            dimension_semantics=("parallel", "arbitrary"),
            vmem_limit_bytes=32 * 1024 * 1024),
    )(lhs_in, rhs)

    if bk_is_lanes:
        raw = jnp.transpose(raw2d.reshape(P, B, K), (1, 0, 2))   # (B, P, K)
        pos = jnp.transpose(pos2d.reshape(P, B, K), (1, 0, 2))
    else:
        raw = jnp.transpose(raw2d.reshape(B, K, P), (0, 2, 1))   # (B, P, K)
        pos = jnp.transpose(pos2d.reshape(B, K, P), (0, 2, 1))
    return raw, pos


def _reference(x, dists, init_ls):
    x = np.asarray(x, np.float32)
    dists = np.asarray(dists, np.float32)
    kernel = np.exp(-0.5 * dists / np.float32(init_ls) ** 2)      # (P, I, J)
    raw = np.einsum('bijk,pij->bpk', x, kernel)                   # sum over (i, j)
    sp = np.where(np.exp(raw) < 1000.0, np.log1p(np.exp(raw)), raw)
    pos = 0.01 + (1.0 - 0.1) * sp
    return raw, pos


if __name__ == "__main__":
    key = jax.random.PRNGKey(0)
    kx, kd = jax.random.split(key)

    B, I, J, K = 2, 16, 16, 3          # batch, grid-y, grid-x, n_params
    P = 8                              # number of off-grid target points
    init_ls = 0.5

    x = jax.random.normal(kx, (B, I, J, K), dtype=jnp.float32)
    # squared distances from P target points to the I*J grid points (non-negative)
    dists = jax.random.uniform(kd, (P, I, J), dtype=jnp.float32,
                               minval=0.0, maxval=4.0)

    raw, pos = final_layer_forward(x, dists, init_ls)
    raw = jax.block_until_ready(raw)
    pos = jax.block_until_ready(pos)

    raw_ref, pos_ref = _reference(x, dists, init_ls)
    np.testing.assert_allclose(np.asarray(raw), raw_ref, rtol=1e-4, atol=1e-4)
    np.testing.assert_allclose(np.asarray(pos), pos_ref, rtol=1e-4, atol=1e-4)

    print("KERNEL_OK")
</pallas_src>

<mosaic_0001>
module attributes {stable_mosaic.version = 11 : i64} {
  func.func @kernel(%arg0: i32, %arg1: i32, %arg2: memref<1x6x256xf32, #tpu.memory_space<vmem>>, %arg3: memref<256x8xf32, #tpu.memory_space<vmem>>, %arg4: memref<6x8xf32, #tpu.memory_space<vmem>>, %arg5: memref<6x8xf32, #tpu.memory_space<vmem>>) attributes {dimension_semantics = [#tpu.dimension_semantics<parallel>, #tpu.dimension_semantics<arbitrary>], iteration_bounds = array<i64: 1, 1>, scalar_prefetch = 0 : i64, scratch_operands = 0 : i64, tpu.core_type = #tpu.core_type<tc>, window_params = [{pipeline_mode = #tpu.pipeline_mode<synchronous>, transform_indices = @transform_0, window_bounds = array<i64: 1, 6, 256>}, {transform_indices = @transform_1, window_bounds = array<i64: 256, 8>}, {transform_indices = @transform_2, window_bounds = array<i64: 6, 8>}, {transform_indices = @transform_3, window_bounds = array<i64: 6, 8>}]} {
    %c0_i32 = arith.constant 0 : i32
    %0 = arith.cmpi eq, %arg1, %c0_i32 : i32
    %1 = arith.extui %0 : i1 to i32
    %c0_i32_0 = arith.constant 0 : i32
    %2 = arith.cmpi ne, %1, %c0_i32_0 : i32
    scf.if %2 {
      %cst_10 = arith.constant 0.000000e+00 : f32
      %14 = vector.broadcast %cst_10 : f32 to vector<6x8xf32>
      %c0_11 = arith.constant 0 : index
      %c0_12 = arith.constant 0 : index
      %15 = vector.load %arg4[%c0_11, %c0_12] : memref<6x8xf32, #tpu.memory_space<vmem>>, vector<6x8xf32>
      tpu.vector_store %arg4[%c0_11, %c0_12], %14 {strides = array<i32>} : memref<6x8xf32, #tpu.memory_space<vmem>>, vector<6x8xf32>,
    } else {
    }
    %3 = arith.index_cast %arg1 : i32 to index
    %c0 = arith.constant 0 : index
    %c0_1 = arith.constant 0 : index
    %4 = vector.load %arg2[%3, %c0, %c0_1] : memref<1x6x256xf32, #tpu.memory_space<vmem>>, vector<1x6x256xf32>
    %5 = vector.shape_cast %4 : vector<1x6x256xf32> to vector<6x256xf32>
    %c0_2 = arith.constant 0 : index
    %c0_3 = arith.constant 0 : index
    %6 = vector.load %arg4[%c0_2, %c0_3] : memref<6x8xf32, #tpu.memory_space<vmem>>, vector<6x8xf32>
    %c0_4 = arith.constant 0 : index
    %c0_5 = arith.constant 0 : index
    %7 = vector.load %arg3[%c0_4, %c0_5] : memref<256x8xf32, #tpu.memory_space<vmem>>, vector<256x8xf32>
    %cst = arith.constant dense<0.000000e+00> : vector<6x8xf32>
    %8 = tpu.matmul %5, %7, %cst {dimension_numbers = #tpu.dot_dimension_numbers<[1], [0], [0], [1], [0, 0, 1, 1], [], []>} : vector<6x256xf32>, vector<256x8xf32>, vector<6x8xf32> -> vector<6x8xf32>
    %9 = arith.addf %6, %8 : vector<6x8xf32>
    %c0_6 = arith.constant 0 : index
    %c0_7 = arith.constant 0 : index
    %10 = vector.load %arg4[%c0_6, %c0_7] : memref<6x8xf32, #tpu.memory_space<vmem>>, vector<6x8xf32>
    tpu.vector_store %arg4[%c0_6, %c0_7], %9 {strides = array<i32>} : memref<6x8xf32, #tpu.memory_space<vmem>>, vector<6x8xf32>,
    %c0_i32_8 = arith.constant 0 : i32
    %11 = arith.cmpi eq, %arg1, %c0_i32_8 : i32
    %12 = arith.extui %11 : i1 to i32
    %c0_i32_9 = arith.constant 0 : i32
    %13 = arith.cmpi ne, %12, %c0_i32_9 : i32
    scf.if %13 {
      %c0_10 = arith.constant 0 : index
      %c0_11 = arith.constant 0 : index
      %14 = vector.load %arg4[%c0_10, %c0_11] : memref<6x8xf32, #tpu.memory_space<vmem>>, vector<6x8xf32>
      %cst_12 = arith.constant 6.90775537 : f32
      %15 = vector.broadcast %cst_12 : f32 to vector<6x8xf32>
      %16 = arith.minimumf %14, %15 : vector<6x8xf32>
      %17 = math.exp %16 : vector<6x8xf32>
      %cst_13 = arith.constant 6.90775537 : f32
      %18 = vector.broadcast %cst_13 : f32 to vector<6x8xf32>
      %19 = arith.cmpf olt, %14, %18 : vector<6x8xf32>
      %20 = math.log1p %17 : vector<6x8xf32>
      %21 = arith.select %19, %20, %14 : vector<6x8xi1>, vector<6x8xf32>
      %cst_14 = arith.constant 0.899999976 : f32
      %22 = vector.broadcast %cst_14 : f32 to vector<6x8xf32>
      %23 = arith.mulf %22, %21 : vector<6x8xf32>
      %cst_15 = arith.constant 0.00999999977 : f32
      %24 = vector.broadcast %cst_15 : f32 to vector<6x8xf32>
      %25 = arith.addf %24, %23 : vector<6x8xf32>
      %c0_16 = arith.constant 0 : index
      %c0_17 = arith.constant 0 : index
      %26 = vector.load %arg5[%c0_16, %c0_17] : memref<6x8xf32, #tpu.memory_space<vmem>>, vector<6x8xf32>
      tpu.vector_store %arg5[%c0_16, %c0_17], %25 {strides = array<i32>} : memref<6x8xf32, #tpu.memory_space<vmem>>, vector<6x8xf32>,
    } else {
    }
    return
  }
  func.func @transform_0(%arg0: i32, %arg1: i32) -> (i32, i32, i32) {
    %c0_i32 = arith.constant 0 : i32
    %c0_i32_0 = arith.constant 0 : i32
    %c0_i32_1 = arith.constant 0 : i32
    %c0_i32_2 = arith.constant 0 : i32
    return %c0_i32, %c0_i32_0, %c0_i32_1 : i32, i32, i32
  }
  func.func @transform_1(%arg0: i32, %arg1: i32) -> (i32, i32) {
    %c0_i32 = arith.constant 0 : i32
    return %arg1, %arg0 : i32, i32
  }
  func.func @transform_2(%arg0: i32, %arg1: i32) -> (i32, i32) {
    %c0_i32 = arith.constant 0 : i32
    %c0_i32_0 = arith.constant 0 : i32
    return %c0_i32, %arg0 : i32, i32
  }
  func.func @transform_3(%arg0: i32, %arg1: i32) -> (i32, i32) {
    %c0_i32 = arith.constant 0 : i32
    %c0_i32_0 = arith.constant 0 : i32
    return %c0_i32, %arg0 : i32, i32
  }
}

</mosaic_0001>

<bundles_post_ra>
// kernel: tpu_custom_call.1
= control target key start
LH: loop header
LB: loop body
LE: loop exit
PB: predicated region body
PF: predicated region fallthrough
CT: control target
= control target key end

     0   :  { %9 = vsyncpa [#allocation3], 0  ;;  %s455_s0 = inlined_call_operand.vmem [shape: f32[1,6,256], index: 0, kind: input, shape index: {}]   ;;  %s456_s1 = inlined_call_operand.vmem [shape: f32[256,8], index: 1, kind: input, shape index: {}]   ;;  %s457_s2 = inlined_call_operand.hbm [shape: f32[6,8], index: 2, kind: output, shape index: {0}]   ;;  %s458_s3 = inlined_call_operand.hbm [shape: f32[6,8], index: 3, kind: output, shape index: {1}]  }
   0x1   :  { %v43_v0 = vld [vmem:[%s456_s1 + $0x80] sm:$0xff]  ;;  %v44_v1 = vld [vmem:[%s456_s1 + $0x88] sm:$0xff]  ;;  %v45_v5 = vld [vmem:[%s456_s1 + $0x90] sm:$0xff] }
   0x2   :  { %v27_v2 = vld [vmem:[%s456_s1] sm:$0xff]  ;;  %v216_v3 = vpack.c.bf16 %v44_v1, %v43_v0  ;;  %v28_v4 = vld [vmem:[%s456_s1 + $0x8] sm:$0xff]  ;;  %v46_v6 = vld [vmem:[%s456_s1 + $0x98] sm:$0xff] }
   0x3   :  { %v218_v7 = vpack.c.bf16 %v28_v4, %v27_v2  ;;  %v220_v8 = vpack.c.bf16 %v46_v6, %v45_v5  ;;  %v29_v9 = vld [vmem:[%s456_s1 + $0x10] sm:$0xff]  ;;  %v30_v10 = vld [vmem:[%s456_s1 + $0x18] sm:$0xff]  ;;  %v47_v11 = vld [vmem:[%s456_s1 + $0xa0] sm:$0xff] }
   0x4   :  { %217 = vmatprep.subr.bf16.mxu0 %v216_v3  ;;  %v48_v12 = vld [vmem:[%s456_s1 + $0xa8] sm:$0xff]  ;;  %v222_v13 = vpack.c.bf16 %v30_v10, %v29_v9  ;;  %v31_v15 = vld [vmem:[%s456_s1 + $0x20] sm:$0xff]  ;;  %v49_v17 = vld [vmem:[%s456_s1 + $0xb0] sm:$0xff] }
   0x5   :  { %219 = vmatpush3.bf16.msra.mxu0 %v218_v7  ;;  %v224_v14 = vpack.c.bf16 %v48_v12, %v47_v11  ;;  %v32_v16 = vld [vmem:[%s456_s1 + $0x28] sm:$0xff]  ;;  %v50_v18 = vld [vmem:[%s456_s1 + $0xb8] sm:$0xff]  ;;  %v33_v21 = vld [vmem:[%s456_s1 + $0x30] sm:$0xff] }
   0x6   :  { %221 = vmatprep.subr.bf16.mxu0 %v220_v8  ;;  %v226_v19 = vpack.c.bf16 %v32_v16, %v31_v15  ;;  %v228_v20 = vpack.c.bf16 %v50_v18, %v49_v17  ;;  %v34_v22 = vld [vmem:[%s456_s1 + $0x38] sm:$0xff]  ;;  %v51_v23 = vld [vmem:[%s456_s1 + $0xc0] sm:$0xff]  ;;  %v52_v24 = vld [vmem:[%s456_s1 + $0xc8] sm:$0xff] }
   0x7   :  { %v25_v25 = vld [vmem:[%s455_s0 + $0x8] sm:$0x3f] }
   0x8   :  { %123 = vmatprep.mubr.f32.mxu0 %v25_v25 }
   0x9   :  { %223 = vmatpush3.bf16.msra.mxu0 %v222_v13 }
   0xa   :  { %225 = vmatprep.subr.bf16.mxu0 %v224_v14 }
   0xb   :  { %10 = vsyncpa [#allocation5], 0  ;;  %v230_v26 = vpack.c.bf16 %v34_v22, %v33_v21  ;;  %v232_v27 = vpack.c.bf16 %v52_v24, %v51_v23  ;;  %v35_v28 = vld [vmem:[%s456_s1 + $0x40] sm:$0xff]  ;;  %v36_v29 = vld [vmem:[%s456_s1 + $0x48] sm:$0xff]  ;;  %vm19_vm0 = vcmask 62464   ;;  %v303_v50 = vmov 0.0  }
   0xc   :  { %v53_v30 = vld [vmem:[%s456_s1 + $0xd0] sm:$0xff]  ;;  %v54_v31 = vld [vmem:[%s456_s1 + $0xd8] sm:$0xff]  ;;  %v234_v32 = vpack.c.bf16 %v36_v29, %v35_v28  ;;  %v55_v36 = vld [vmem:[%s456_s1 + $0xe0] sm:$0xff]  ;;  %20 = vst.msk [vmem:[#allocation2] sm:$0x3f] %vm19_vm0, %v303_v50  ;;  %s304_s26 = smov [#allocation2]  }
   0xd   :  { %227 = vmatpush3.bf16.msra.mxu0 %v226_v19  ;;  %v236_v33 = vpack.c.bf16 %v54_v31, %v53_v30  ;;  %v37_v34 = vld [vmem:[%s456_s1 + $0x50] sm:$0xff]  ;;  %v38_v35 = vld [vmem:[%s456_s1 + $0x58] sm:$0xff]  ;;  %v56_v37 = vld [vmem:[%s456_s1 + $0xe8] sm:$0xff]  ;;  %s159_s27 = sshll.u32 %s304_s26, 4  ;;  %s160_s27 = int_to_ptr.vmem [resolvable:$true] %s159_s27 }
   0xe   :  { %229 = vmatprep.subr.bf16.mxu0 %v228_v20  ;;  %v238_v38 = vpack.c.bf16 %v38_v35, %v37_v34  ;;  %v240_v39 = vpack.c.bf16 %v56_v37, %v55_v36  ;;  %v39_v40 = vld [vmem:[%s456_s1 + $0x60] sm:$0xff]  ;;  %v40_v41 = vld [vmem:[%s456_s1 + $0x68] sm:$0xff]  ;;  %v57_v42 = vld [vmem:[%s456_s1 + $0xf0] sm:$0xff]  ;;  %p260_p1 = scmp.lt.s32.totalorder %s160_s27, %s160_s27 }
   0xf   :  { %v58_v43 = vld [vmem:[%s456_s1 + $0xf8] sm:$0xff]  ;;  %v242_v44 = vpack.c.bf16 %v40_v41, %v39_v40  ;;  %v41_v46 = vld [vmem:[%s456_s1 + $0x70] sm:$0xff]  ;;  %v24_v49 = vld [vmem:[%s455_s0] sm:$0x3f] }
  0x10   :  { %v244_v45 = vpack.c.bf16 %v58_v43, %v57_v42  ;;  %v42_v47 = vld [vmem:[%s456_s1 + $0x78] sm:$0xff]  ;;  %s255_s1 = scalar_lea.vmem %s160_s27, 128 }
  0x11   :  { %231 = vmatpush3.bf16.msra.mxu0 %v230_v26  ;;  %v246_v48 = vpack.c.bf16 %v42_v47, %v41_v46  ;;  %p256_p0 = scmp.ne.s32.totalorder %s160_s27, %s255_s1  ;;  %p261_p2 = scmp.lt.s32.totalorder %s255_s1, %s255_s1 }
  0x12   :  { %233 = vmatprep.subr.bf16.mxu0 %v232_v27 }
  0x13   :  { %v26_v52 = vld [vmem:[#allocation2] sm:$0x3f]  ;;  %p262_p3 = por %p261_p2, %p260_p1 }
  0x15   :  { %235 = vmatpush3.bf16.msra.mxu0 %v234_v32  ;;  %p263_p4 = pnand %p262_p3, %p256_p0 }
  0x16   :  { %237 = vmatprep.subr.bf16.mxu0 %v236_v33 }
  0x19   :  { %239 = vmatpush3.bf16.msra.mxu0 %v238_v38 }
  0x1a   :  { %241 = vmatprep.subr.bf16.mxu0 %v240_v39 }
  0x1d   :  { %243 = vmatpush3.bf16.msra.mxu0 %v242_v44 }
  0x1e   :  { %245 = vmatprep.subr.bf16.mxu0 %v244_v45 }
  0x21   :  { %247 = vmatpush3.bf16.msra.mxu0 %v246_v48 }
  0x24   :  { %124 = vmatmul.mubr.f32.vlgmr.msra.gmra.mrb[0].mxu0 %v24_v49 }
  0xf7   :  { %v213_v51 = vpop.f32.mrb[0].mxu0 }
  0xf8   :  { %v214_v53 = vpop.f32.mrb[1].mxu0 }
  0xf9   :  { %v215_v54 = vadd.f32 %v214_v53, %v213_v51 }
  0xfb   :  { %v129_v55 = vadd.f32 %v215_v54, %v26_v52 }
  0xfd   :  { %131 = vst.msk [vmem:[#allocation2] sm:$0x3f] %vm19_vm0, %v129_v55 }
  0xfe   :  { %266 = shalt.err (!%p263_p4)
}
  0xff   :  { %s267_s29 = scalar_lea.hbm %s457_s2, 128 }
 0x100   :  { %p268_p5 = scmp.ne.s32.totalorder %s457_s2, %s267_s29  ;;  %p271_p6 = scmp.lt.u32.totalorder %s267_s29, %s457_s2 }
 0x102   :  { %p273_p7 = pnand %p271_p6, %p268_p5 }
 0x104   :  { %276 = shalt.err (!%p273_p7)
}
 0x105   :  { %162 = dma.vmem_to_hbm [thread:$0]  %s160_s27, 128, %s457_s2, [#allocation3]   ;;  %v135_v56 = vld [vmem:[#allocation2] sm:$0x3f] }
 0x106   :  { %v136_v57 = vmin.f32 %v135_v56, 6.9077554  ;;  %vm139_vm2 = vcmp.lt.f32.partialorder %v135_v56, 6.9077554  ;;  %s305_s9 = smov [#allocation4]  }
 0x107   :  { %s169_s10 = sshll.u32 %s305_s9, 4  ;;  %s170_s10 = int_to_ptr.vmem [resolvable:$true] %s169_s10 }
 0x108   :  { %v137_v58 = vmul.f32 1.442695, %v136_v57  ;;  %s277_s2 = scalar_lea.vmem %s170_s10, 128  ;;  %p282_p9 = scmp.lt.s32.totalorder %s170_s10, %s170_s10 }
 0x109   :  { %p278_p8 = scmp.ne.s32.totalorder %s170_s10, %s277_s2  ;;  %p283_p10 = scmp.lt.s32.totalorder %s277_s2, %s277_s2 }
 0x10a   :  { %251 = vpow2.f32 %v137_v58 }
 0x10b   :  { %p284_p11 = por %p283_p10, %p282_p9 }
 0x10d   :  { %p285_p12 = pnand %p284_p11, %p278_p8 }
 0x114   :  { %v252_v59 = vpop.eup %251 }
 0x115   :  { %v140_v60 = vadd.f32 1.0, %v252_v59  ;;  %v143_v61 = vmul.f32 -0.5, %v252_v59  ;;  %v146_v63 = vand.u32 2147483647, %v252_v59 }
 0x117   :  { %253 = vlog2.f32 %v140_v60  ;;  %v144_v62 = vadd.f32 1.0, %v143_v61  ;;  %vm147_vm1 = vcmp.lt.f32.partialorder %v146_v63, 0.0004427343 }
 0x119   :  { %v145_v2 = vmul.f32 %v252_v59, %v144_v62 }
 0x121   :  { %v254_v0 = vpop.eup %253 }
 0x122   :  { %v142_v1 = vmul.f32 0.6931472, %v254_v0 }
 0x124   :  { %v148_v3 = vsel %vm147_vm1, %v145_v2, %v142_v1 }
 0x125   :  { %v149_v4 = vsel %vm139_vm2, %v148_v3, %v135_v56 }
 0x126   :  { %v150_v5 = vmul.f32 0.9, %v149_v4 }
 0x128   :  { %v151_v6 = vadd.f32 0.01, %v150_v5 }
 0x12a   :  { %152 = vst.msk [vmem:[#allocation4] sm:$0x3f] %vm19_vm0, %v151_v6 }
 0x12b   :  { %288 = shalt.err (!%p285_p12)
}
 0x12c   :  { %s289_s13 = scalar_lea.hbm %s458_s3, 128 }
 0x12d   :  { %p290_p13 = scmp.ne.s32.totalorder %s458_s3, %s289_s13  ;;  %p293_p0 = scmp.lt.u32.totalorder %s289_s13, %s458_s3 }
 0x12f   :  { %p295_p1 = pnand %p293_p0, %p290_p13 }
 0x131   :  { %298 = shalt.err (!%p295_p1)
}
 0x132   :  { %172 = dma.vmem_to_hbm [thread:$0]  %s170_s10, 128, %s458_s3, [#allocation5]  }
 0x133   :  { %299 = dma.done.wait [#allocation3], 128  }
 0x134   :  { %300 = vsyncadd [#allocation3], 4294967168 }
 0x135   :  { %301 = dma.done.wait [#allocation5], 128  }
 0x136   :  { %302 = vsyncadd [#allocation5], 4294967168 }
 0x137   :  { %179 = vsyncpa [#allocation3], 1 }
 0x138   :  { %180 = vsyncpa [#allocation5], 1 }

</bundles_post_ra>
